<compile_context>
chip_gen: v7x
topology: tpu7x:2x2x1
jax: 0.10.0
libtpu: 0.0.40
codegen_flags: <defaults>
</compile_context>

<pallas_src>
import functools

import jax
import jax.numpy as jnp
import numpy as np
from jax.experimental import pallas as pl
from jax.experimental.pallas import tpu as pltpu


def _round_up(x, m):
    return ((x + m - 1) // m) * m


def _cdiv(a, b):
    return (a + b - 1) // b


_VMEM_LIMIT = 32 * 1024 * 1024             # scoped VMEM request, safe on v5e/v6e/v7x
_FASTPATH_MAX_F32_BYTES = 4 * 1024 * 1024  # whole-tensor-in-VMEM fused path threshold
_TARGET_TILE_BYTES = 4 * 1024 * 1024       # ~4 MiB per streamed array per grid step
_THW_CAP = 2048                            # lane-tile cap (multiple of 128)


# ---------------------------------------------------------------------------
# Fused single-kernel path: whole (N, C, HW) tensor resident in VMEM.
# HBM traffic: 1 read + 1 write (vs 2 reads + 1 write for the tiled path).
# ---------------------------------------------------------------------------
def _make_fused_kernel(n, hw, eps):
    inv_hw = 1.0 / float(hw)

    def kernel(x_ref, mw_ref, vw_ref, gamma_ref, beta_ref, o_ref):
        x = x_ref[...].astype(jnp.float32)                       # (N, C, HW)
        s = jnp.sum(x, axis=-1, keepdims=True)                   # (N, C, 1)
        sq = jnp.sum(x * x, axis=-1, keepdims=True)               # (N, C, 1)
        mean_in = s * inv_hw
        # torch.Tensor.var(-1) default: unbiased (divides by HW - 1); clamp
        # >= 0 against single-pass cancellation (torch.var is non-negative).
        var_in = (sq - float(hw) * mean_in * mean_in) / jnp.float32(hw - 1)
        var_in = jnp.maximum(var_in, 0.0)
        temp = var_in + mean_in * mean_in

        # LN stats: mean over channels (sublane reduce).
        mean_ln = jnp.mean(mean_in, axis=1, keepdims=True)        # (N, 1, 1)
        var_ln = jnp.mean(temp, axis=1, keepdims=True) - mean_ln * mean_ln

        # BN stats: mean over batch (leading dim).  Unrolled adds for small N
        # (guaranteed lowering); jnp reduce otherwise.
        if n <= 64:
            sum_m = mean_in[0:1]
            sum_t = temp[0:1]
            for b in range(1, n):
                sum_m = sum_m + mean_in[b:b + 1]
                sum_t = sum_t + temp[b:b + 1]
            mean_bn = sum_m * (1.0 / float(n))                     # (1, C, 1)
            var_bn = sum_t * (1.0 / float(n)) - mean_bn * mean_bn
        else:
            mean_bn = jnp.mean(mean_in, axis=0, keepdims=True)
            var_bn = jnp.mean(temp, axis=0, keepdims=True) - mean_bn * mean_bn

        # Softmax mixing weights are scalars in SMEM.
        mean = mw_ref[0] * mean_in + mw_ref[1] * mean_ln + mw_ref[2] * mean_bn
        var = vw_ref[0] * var_in + vw_ref[1] * var_ln + vw_ref[2] * var_bn

        scale = gamma_ref[...] * jax.lax.rsqrt(var + eps)          # (N, C, 1)
        shift = beta_ref[...] - mean * scale
        o_ref[...] = (x * scale + shift).astype(o_ref.dtype)

    return kernel


def _fused_forward(x3, mw, vw, gamma3, beta3, eps):
    n, c, hw = x3.shape
    kernel = _make_fused_kernel(n, hw, eps)
    return pl.pallas_call(
        kernel,
        out_shape=jax.ShapeDtypeStruct((n, c, hw), x3.dtype),
        in_specs=[
            pl.BlockSpec(memory_space=pltpu.MemorySpace.VMEM),    # x (whole)
            pl.BlockSpec(memory_space=pltpu.MemorySpace.SMEM),    # softmax(mean_weight)
            pl.BlockSpec(memory_space=pltpu.MemorySpace.SMEM),    # softmax(var_weight)
            pl.BlockSpec(memory_space=pltpu.MemorySpace.VMEM),    # gamma (1, C, 1)
            pl.BlockSpec(memory_space=pltpu.MemorySpace.VMEM),    # beta  (1, C, 1)
        ],
        out_specs=pl.BlockSpec(memory_space=pltpu.MemorySpace.VMEM),
        compiler_params=pltpu.CompilerParams(vmem_limit_bytes=_VMEM_LIMIT),
    )(x3, mw, vw, gamma3, beta3)


# ---------------------------------------------------------------------------
# Tiled two-pass path for large tensors (streaming, memory-bound).
# ---------------------------------------------------------------------------
def _make_stats_kernel(thw, hw, lane_blocked, mask_tail):
    def kernel(x_ref, sum_ref, sq_ref):
        j = pl.program_id(1)

        @pl.when(j == 0)
        def _():
            sum_ref[...] = jnp.zeros_like(sum_ref)
            sq_ref[...] = jnp.zeros_like(sq_ref)

        x = x_ref[...].astype(jnp.float32)                         # (tnc, thw)
        if mask_tail:
            # HW is not a multiple of thw: zero the out-of-bounds tail columns
            # of the last lane block (their VMEM contents are garbage).
            col = j * thw + jax.lax.broadcasted_iota(jnp.int32, x.shape, 1)
            x = jnp.where(col < hw, x, 0.0)

        if lane_blocked:
            # Lane-blocked accumulation: pure VPU adds over 128-wide slices;
            # the final 128 -> 1 reduce happens once in the JAX glue.
            part = x[:, 0:128]
            partsq = part * part
            for i in range(1, thw // 128):
                c = x[:, i * 128:(i + 1) * 128]
                part = part + c
                partsq = partsq + c * c
            sum_ref[...] += part
            sq_ref[...] += partsq
        else:
            sum_ref[...] += jnp.sum(x, axis=-1, keepdims=True)
            sq_ref[...] += jnp.sum(x * x, axis=-1, keepdims=True)

    return kernel


def _normalize_kernel(x_ref, scale_ref, shift_ref, o_ref):
    # out = x * scale + shift  (per-(n,c) scalars), lane-dense output tile.
    x = x_ref[...].astype(jnp.float32)
    o_ref[...] = (x * scale_ref[...] + shift_ref[...]).astype(o_ref.dtype)


def _choose_tiles(nc, hw):
    # Lane tile: full extent if it fits the cap (always legal), else a
    # 128-multiple tile of 2048 (tail handled by in-kernel masking).
    thw = hw if hw <= _THW_CAP else _THW_CAP
    if nc <= 8:
        tnc = nc                                   # full extent: legal for any nc
    else:
        target_rows = max(8, _TARGET_TILE_BYTES // (4 * thw))
        tnc = min((nc // 8) * 8, _round_up(target_rows, 8))
        # >= 2 NC blocks whenever possible so both v7x TensorCores get work on
        # the "parallel" axis of the stats pass.
        tnc = max(8, min(tnc, _round_up((nc + 1) // 2, 8)))
    return tnc, thw


# ---------------------------------------------------------------------------
# Public wrapper.
# ---------------------------------------------------------------------------
@functools.partial(jax.jit, static_argnames=("eps", "force_two_pass"))
def switch_norm_2d(x, weight, bias, mean_weight, var_weight, eps=1e-5,
                   force_two_pass=False):
    """SwitchNorm2d forward (training mode, using_bn=True)."""
    if x.ndim != 4:
        raise ValueError("expected 4D input (got {}D input)".format(x.ndim))
    N, C, H, W = x.shape
    HW = H * W
    NC = N * C

    mw = jax.nn.softmax(mean_weight.reshape(-1).astype(jnp.float32), axis=0)
    vw = jax.nn.softmax(var_weight.reshape(-1).astype(jnp.float32), axis=0)
    gamma = weight.reshape(1, C).astype(jnp.float32)
    beta = bias.reshape(1, C).astype(jnp.float32)

    # TODO(synk): in-place running_mean / running_var momentum update (training
    #             side effect that does not affect the returned tensor) omitted.

    # ------------- fast path: whole tensor resident in VMEM (1R + 1W) -------------
    if (not force_two_pass) and NC * HW * 4 <= _FASTPATH_MAX_F32_BYTES:
        x3 = x.reshape(N, C, HW)
        out3 = _fused_forward(x3, mw, vw, gamma.reshape(1, C, 1),
                              beta.reshape(1, C, 1), float(eps))
        return out3.reshape(N, C, H, W)

    # ------------- tiled two-pass path (2R + 1W, no padding copies) ---------------
    x2 = x.reshape(NC, HW)
    tnc, thw = _choose_tiles(NC, HW)
    lane_blocked = (thw % 128 == 0)
    mask_tail = (HW % thw != 0)
    stat_w = 128 if lane_blocked else 1
    grid = (_cdiv(NC, tnc), _cdiv(HW, thw))

    # Pass 1: per-(n, c) sum / sum-of-squares; HW axis last + "arbitrary",
    # accumulators resident across it.
    sum_x, sum_xx = pl.pallas_call(
        _make_stats_kernel(thw, HW, lane_blocked, mask_tail),
        out_shape=(jax.ShapeDtypeStruct((NC, stat_w), jnp.float32),
                   jax.ShapeDtypeStruct((NC, stat_w), jnp.float32)),
        grid=grid,
        in_specs=[pl.BlockSpec((tnc, thw), lambda i, j: (i, j))],
        out_specs=(pl.BlockSpec((tnc, stat_w), lambda i, j: (i, 0)),
                   pl.BlockSpec((tnc, stat_w), lambda i, j: (i, 0))),
        compiler_params=pltpu.CompilerParams(
            dimension_semantics=("parallel", "arbitrary"),
            vmem_limit_bytes=_VMEM_LIMIT),
    )(x2)

    # Tiny (N, C) glue: IN / LN / BN statistics, softmax mixing, fold gamma,
    # beta, rsqrt(var + eps) and mean into per-(n, c) scale & shift.
    s = jnp.sum(sum_x, axis=-1).reshape(N, C)
    sq = jnp.sum(sum_xx, axis=-1).reshape(N, C)

    hw_f = jnp.float32(HW)
    mean_in = s / hw_f
    var_in = (sq - hw_f * mean_in * mean_in) / jnp.float32(HW - 1)
    var_in = jnp.maximum(var_in, 0.0)        # torch.var is non-negative
    temp = var_in + mean_in * mean_in

    mean_ln = jnp.mean(mean_in, axis=1, keepdims=True)
    var_ln = jnp.mean(temp, axis=1, keepdims=True) - mean_ln * mean_ln
    mean_bn = jnp.mean(mean_in, axis=0, keepdims=True)
    var_bn = jnp.mean(temp, axis=0, keepdims=True) - mean_bn * mean_bn

    mean = mw[0] * mean_in + mw[1] * mean_ln + mw[2] * mean_bn
    var = vw[0] * var_in + vw[1] * var_ln + vw[2] * var_bn

    scale = gamma * jax.lax.rsqrt(var + jnp.float32(eps))    # (N, C)
    shift = beta - mean * scale

    # Pass 2: out = x * scale + shift, written at the true (NC, HW) shape.
    out2 = pl.pallas_call(
        _normalize_kernel,
        out_shape=jax.ShapeDtypeStruct((NC, HW), x.dtype),
        grid=grid,
        in_specs=[pl.BlockSpec((tnc, thw), lambda i, j: (i, j)),
                  pl.BlockSpec((tnc, 1), lambda i, j: (i, 0)),
                  pl.BlockSpec((tnc, 1), lambda i, j: (i, 0))],
        out_specs=pl.BlockSpec((tnc, thw), lambda i, j: (i, j)),
        compiler_params=pltpu.CompilerParams(
            dimension_semantics=("parallel", "parallel"),
            vmem_limit_bytes=_VMEM_LIMIT),
    )(x2, scale.reshape(NC, 1), shift.reshape(NC, 1))

    return out2.reshape(N, C, H, W)


# ---------------------------------------------------------------------------
# Pure-JAX reference (mirror of the PyTorch forward, training, using_bn=True).
# ---------------------------------------------------------------------------
def _reference_switch_norm_2d(x, weight, bias, mean_weight, var_weight, eps=1e-5):
    N, C, H, W = x.shape
    xv = x.reshape(N, C, -1).astype(jnp.float32)
    mean_in = xv.mean(-1, keepdims=True)
    var_in = xv.var(-1, keepdims=True, ddof=1)       # torch .var default: unbiased
    mean_ln = mean_in.mean(1, keepdims=True)
    temp = var_in + mean_in ** 2
    var_ln = temp.mean(1, keepdims=True) - mean_ln ** 2
    mean_bn = mean_in.mean(0, keepdims=True)
    var_bn = temp.mean(0, keepdims=True) - mean_bn ** 2
    mw = jax.nn.softmax(mean_weight.reshape(-1).astype(jnp.float32), axis=0)
    vw = jax.nn.softmax(var_weight.reshape(-1).astype(jnp.float32), axis=0)
    mean = mw[0] * mean_in + mw[1] * mean_ln + mw[2] * mean_bn
    var = vw[0] * var_in + vw[1] * var_ln + vw[2] * var_bn
    xn = (xv - mean) / jnp.sqrt(var + eps)
    xn = xn.reshape(N, C, H, W)
    return xn * weight.astype(jnp.float32) + bias.astype(jnp.float32)


if __name__ == "__main__":
    root = jax.random.PRNGKey(0)

    # (shape, force_two_pass, tolerance)
    cases = [
        ((2, 4, 16, 16), False, 1e-5),  # fused single-kernel VMEM-resident path
        ((2, 4, 20, 20), True, 1e-4),   # tiled: full-extent HW block (no padding)
        ((3, 5, 48, 48), True, 1e-4),   # tiled: 2048-lane tiles + tail mask +
                                        #        partial NC block + lane-blocked stats
    ]
    for idx, (shape, two_pass, tol) in enumerate(cases):
        keys = jax.random.split(jax.random.fold_in(root, idx), 5)
        N, C, H, W = shape
        x = jax.random.normal(keys[0], shape, dtype=jnp.float32)
        weight = jax.random.normal(keys[1], (1, C, 1, 1), dtype=jnp.float32)
        bias = jax.random.normal(keys[2], (1, C, 1, 1), dtype=jnp.float32)
        mean_weight = jax.random.normal(keys[3], (3,), dtype=jnp.float32)
        var_weight = jax.random.normal(keys[4], (3,), dtype=jnp.float32)

        out = switch_norm_2d(x, weight, bias, mean_weight, var_weight,
                             eps=1e-5, force_two_pass=two_pass)
        out = jax.block_until_ready(out)
        ref = _reference_switch_norm_2d(x, weight, bias, mean_weight,
                                        var_weight, eps=1e-5)
        np.testing.assert_allclose(np.asarray(out), np.asarray(ref),
                                   rtol=tol, atol=tol)

    print("KERNEL_OK")
</pallas_src>

<mosaic_0001>
module attributes {stable_mosaic.version = 11 : i64} {
  func.func @kernel(%arg0: memref<2x4x256xf32, #tpu.memory_space<vmem>>, %arg1: memref<3xf32, #tpu.memory_space<smem>>, %arg2: memref<3xf32, #tpu.memory_space<smem>>, %arg3: memref<1x4x1xf32, #tpu.memory_space<vmem>>, %arg4: memref<1x4x1xf32, #tpu.memory_space<vmem>>, %arg5: memref<2x4x256xf32, #tpu.memory_space<vmem>>) attributes {dimension_semantics = [], scalar_prefetch = 0 : i64, scratch_operands = 0 : i64, tpu.core_type = #tpu.core_type<tc>} {
    %c0 = arith.constant 0 : index
    %c0_0 = arith.constant 0 : index
    %c0_1 = arith.constant 0 : index
    %0 = vector.load %arg0[%c0, %c0_0, %c0_1] : memref<2x4x256xf32, #tpu.memory_space<vmem>>, vector<2x4x256xf32>
    %cst = arith.constant dense<0.000000e+00> : vector<2x4xf32>
    %1 = vector.multi_reduction <add>, %0, %cst [2] : vector<2x4x256xf32> to vector<2x4xf32>
    %2 = vector.shape_cast %1 : vector<2x4xf32> to vector<2x4x1xf32>
    %3 = arith.mulf %0, %0 : vector<2x4x256xf32>
    %cst_2 = arith.constant dense<0.000000e+00> : vector<2x4xf32>
    %4 = vector.multi_reduction <add>, %3, %cst_2 [2] : vector<2x4x256xf32> to vector<2x4xf32>
    %5 = vector.shape_cast %4 : vector<2x4xf32> to vector<2x4x1xf32>
    %cst_3 = arith.constant 3.906250e-03 : f32
    %6 = vector.broadcast %cst_3 : f32 to vector<2x4x1xf32>
    %7 = arith.mulf %2, %6 : vector<2x4x1xf32>
    %cst_4 = arith.constant 2.560000e+02 : f32
    %8 = vector.broadcast %cst_4 : f32 to vector<2x4x1xf32>
    %9 = arith.mulf %8, %7 : vector<2x4x1xf32>
    %10 = arith.mulf %9, %7 : vector<2x4x1xf32>
    %11 = arith.subf %5, %10 : vector<2x4x1xf32>
    %cst_5 = arith.constant 2.550000e+02 : f32
    %12 = vector.broadcast %cst_5 : f32 to vector<2x4x1xf32>
    %13 = arith.divf %11, %12 : vector<2x4x1xf32>
    %cst_6 = arith.constant 0.000000e+00 : f32
    %14 = vector.broadcast %cst_6 : f32 to vector<2x4x1xf32>
    %15 = arith.maximumf %13, %14 : vector<2x4x1xf32>
    %16 = arith.mulf %7, %7 : vector<2x4x1xf32>
    %17 = arith.addf %15, %16 : vector<2x4x1xf32>
    %cst_7 = arith.constant dense<0.000000e+00> : vector<2x1xf32>
    %18 = vector.multi_reduction <add>, %7, %cst_7 [1] : vector<2x4x1xf32> to vector<2x1xf32>
    %19 = vector.shape_cast %18 : vector<2x1xf32> to vector<2x1x1xf32>
    %cst_8 = arith.constant 4.000000e+00 : f32
    %20 = vector.broadcast %cst_8 : f32 to vector<2x1x1xf32>
    %21 = arith.divf %19, %20 : vector<2x1x1xf32>
    %cst_9 = arith.constant dense<0.000000e+00> : vector<2x1xf32>
    %22 = vector.multi_reduction <add>, %17, %cst_9 [1] : vector<2x4x1xf32> to vector<2x1xf32>
    %23 = vector.shape_cast %22 : vector<2x1xf32> to vector<2x1x1xf32>
    %cst_10 = arith.constant 4.000000e+00 : f32
    %24 = vector.broadcast %cst_10 : f32 to vector<2x1x1xf32>
    %25 = arith.divf %23, %24 : vector<2x1x1xf32>
    %26 = arith.mulf %21, %21 : vector<2x1x1xf32>
    %27 = arith.subf %25, %26 : vector<2x1x1xf32>
    %28 = vector.extract_strided_slice %7 {offsets = [0, 0, 0], sizes = [1, 4, 1], strides = [1, 1, 1]} : vector<2x4x1xf32> to vector<1x4x1xf32>
    %29 = vector.extract_strided_slice %17 {offsets = [0, 0, 0], sizes = [1, 4, 1], strides = [1, 1, 1]} : vector<2x4x1xf32> to vector<1x4x1xf32>
    %30 = vector.extract_strided_slice %7 {offsets = [1, 0, 0], sizes = [1, 4, 1], strides = [1, 1, 1]} : vector<2x4x1xf32> to vector<1x4x1xf32>
    %31 = arith.addf %28, %30 : vector<1x4x1xf32>
    %32 = vector.extract_strided_slice %17 {offsets = [1, 0, 0], sizes = [1, 4, 1], strides = [1, 1, 1]} : vector<2x4x1xf32> to vector<1x4x1xf32>
    %33 = arith.addf %29, %32 : vector<1x4x1xf32>
    %cst_11 = arith.constant 5.000000e-01 : f32
    %34 = vector.broadcast %cst_11 : f32 to vector<1x4x1xf32>
    %35 = arith.mulf %31, %34 : vector<1x4x1xf32>
    %cst_12 = arith.constant 5.000000e-01 : f32
    %36 = vector.broadcast %cst_12 : f32 to vector<1x4x1xf32>
    %37 = arith.mulf %33, %36 : vector<1x4x1xf32>
    %38 = arith.mulf %35, %35 : vector<1x4x1xf32>
    %39 = arith.subf %37, %38 : vector<1x4x1xf32>
    %c0_13 = arith.constant 0 : index
    %40 = memref.load %arg1[%c0_13] : memref<3xf32, #tpu.memory_space<smem>>
    %41 = vector.broadcast %40 : f32 to vector<2x4x1xf32>
    %42 = arith.mulf %41, %7 : vector<2x4x1xf32>
    %c1 = arith.constant 1 : index
    %43 = memref.load %arg1[%c1] : memref<3xf32, #tpu.memory_space<smem>>
    %44 = vector.broadcast %43 : f32 to vector<2x1x1xf32>
    %45 = arith.mulf %44, %21 : vector<2x1x1xf32>
    %46 = vector.broadcast %45 : vector<2x1x1xf32> to vector<2x4x1xf32>
    %47 = arith.addf %42, %46 : vector<2x4x1xf32>
    %c2 = arith.constant 2 : index
    %48 = memref.load %arg1[%c2] : memref<3xf32, #tpu.memory_space<smem>>
    %49 = vector.broadcast %48 : f32 to vector<1x4x1xf32>
    %50 = arith.mulf %49, %35 : vector<1x4x1xf32>
    %51 = vector.broadcast %50 : vector<1x4x1xf32> to vector<2x4x1xf32>
    %52 = arith.addf %47, %51 : vector<2x4x1xf32>
    %c0_14 = arith.constant 0 : index
    %53 = memref.load %arg2[%c0_14] : memref<3xf32, #tpu.memory_space<smem>>
    %54 = vector.broadcast %53 : f32 to vector<2x4x1xf32>
    %55 = arith.mulf %54, %15 : vector<2x4x1xf32>
    %c1_15 = arith.constant 1 : index
    %56 = memref.load %arg2[%c1_15] : memref<3xf32, #tpu.memory_space<smem>>
    %57 = vector.broadcast %56 : f32 to vector<2x1x1xf32>
    %58 = arith.mulf %57, %27 : vector<2x1x1xf32>
    %59 = vector.broadcast %58 : vector<2x1x1xf32> to vector<2x4x1xf32>
    %60 = arith.addf %55, %59 : vector<2x4x1xf32>
    %c2_16 = arith.constant 2 : index
    %61 = memref.load %arg2[%c2_16] : memref<3xf32, #tpu.memory_space<smem>>
    %62 = vector.broadcast %61 : f32 to vector<1x4x1xf32>
    %63 = arith.mulf %62, %39 : vector<1x4x1xf32>
    %64 = vector.broadcast %63 : vector<1x4x1xf32> to vector<2x4x1xf32>
    %65 = arith.addf %60, %64 : vector<2x4x1xf32>
    %c0_17 = arith.constant 0 : index
    %c0_18 = arith.constant 0 : index
    %c0_19 = arith.constant 0 : index
    %66 = vector.load %arg3[%c0_17, %c0_18, %c0_19] : memref<1x4x1xf32, #tpu.memory_space<vmem>>, vector<1x4x1xf32>
    %cst_20 = arith.constant 9.99999974E-6 : f32
    %67 = vector.broadcast %cst_20 : f32 to vector<2x4x1xf32>
    %68 = arith.addf %65, %67 : vector<2x4x1xf32>
    %69 = math.rsqrt %68 : vector<2x4x1xf32>
    %70 = vector.broadcast %66 : vector<1x4x1xf32> to vector<2x4x1xf32>
    %71 = arith.mulf %70, %69 : vector<2x4x1xf32>
    %c0_21 = arith.constant 0 : index
    %c0_22 = arith.constant 0 : index
    %c0_23 = arith.constant 0 : index
    %72 = vector.load %arg4[%c0_21, %c0_22, %c0_23] : memref<1x4x1xf32, #tpu.memory_space<vmem>>, vector<1x4x1xf32>
    %73 = arith.mulf %52, %71 : vector<2x4x1xf32>
    %74 = vector.broadcast %72 : vector<1x4x1xf32> to vector<2x4x1xf32>
    %75 = arith.subf %74, %73 : vector<2x4x1xf32>
    %76 = vector.broadcast %71 : vector<2x4x1xf32> to vector<2x4x256xf32>
    %77 = arith.mulf %0, %76 : vector<2x4x256xf32>
    %78 = vector.broadcast %75 : vector<2x4x1xf32> to vector<2x4x256xf32>
    %79 = arith.addf %77, %78 : vector<2x4x256xf32>
    %c0_24 = arith.constant 0 : index
    %c0_25 = arith.constant 0 : index
    %c0_26 = arith.constant 0 : index
    %80 = vector.load %arg5[%c0_24, %c0_25, %c0_26] : memref<2x4x256xf32, #tpu.memory_space<vmem>>, vector<2x4x256xf32>
    tpu.vector_store %arg5[%c0_24, %c0_25, %c0_26], %79 {strides = array<i32>} : memref<2x4x256xf32, #tpu.memory_space<vmem>>, vector<2x4x256xf32>,
    return
  }
}

</mosaic_0001>

<bundles_post_ra>
// kernel: switch_norm_2d.1
= control target key start
LH: loop header
LB: loop body
LE: loop exit
PB: predicated region body
PF: predicated region fallthrough
CT: control target
= control target key end

     0   :  { %10 = vsyncpa [#allocation3], 0  ;;  %s398_s0 = inlined_call_operand.vmem [shape: f32[2,4,256], index: 0, kind: input, shape index: {}]   ;;  %s399_s1 = inlined_call_operand.vmem [shape: f32[3], index: 1, kind: input, shape index: {}]   ;;  %s400_s2 = inlined_call_operand.vmem [shape: f32[3], index: 2, kind: input, shape index: {}]   ;;  %s401_s3 = inlined_call_operand.vmem [shape: f32[1,4,1], index: 3, kind: input, shape index: {}]   ;;  %s402_s4 = inlined_call_operand.vmem [shape: f32[1,4,1], index: 4, kind: input, shape index: {}]   ;;  %s403_s5 = inlined_call_operand.vmem [shape: f32[2,4,256], index: 5, kind: output, shape index: {}]  }
   0x1   :  { %s20_s20 = sshll.u32 %s399_s1, 4  ;;  %s21_s20 = int_to_ptr.vmem [resolvable:$true] %s20_s20 }
   0x2   :  { %11 = vsyncpa [#allocation5], 0  ;;  %s30_s23 = sshll.u32 %s400_s2, 4  ;;  %s260_s24 = scalar_lea.vmem %s21_s20, 16  ;;  %s31_s23 = int_to_ptr.vmem [resolvable:$true] %s30_s23 }
   0x3   :  { %p261_p0 = scmp.ne.s32.totalorder %s21_s20, %s260_s24  ;;  %p265_p1 = scmp.lt.s32.totalorder %s21_s20, %s21_s20 }
   0x4   :  { %p266_p2 = scmp.lt.s32.totalorder %s260_s24, %s260_s24 }
   0x6   :  { %p267_p3 = por %p266_p2, %p265_p1 }
   0x8   :  { %p268_p4 = pnand %p267_p3, %p261_p0 }
   0xa   :  { %271 = shalt.err (!%p268_p4)
}
   0xb   :  { %s288_s25 = smov [#allocation2]   ;;  %s272_s26 = scalar_lea.vmem %s31_s23, 16 }
   0xc   :  { %23 = dma.vmem_to_smem %s21_s20, 16, %s288_s25, [#allocation3]  }
   0xd   :  { %p273_p5 = scmp.ne.s32.totalorder %s31_s23, %s272_s26  ;;  %p277_p6 = scmp.lt.s32.totalorder %s31_s23, %s31_s23 }
   0xe   :  { %p278_p7 = scmp.lt.s32.totalorder %s272_s26, %s272_s26 }
  0x10   :  { %p279_p8 = por %p278_p7, %p277_p6 }
  0x12   :  { %p280_p9 = pnand %p279_p8, %p273_p5 }
  0x14   :  { %283 = shalt.err (!%p280_p9)
}
  0x15   :  { %s289_s1 = smov [#allocation4]  }
  0x16   :  { %33 = dma.vmem_to_smem %s31_s23, 16, %s289_s1, [#allocation5]  }
  0x17   :  { %284 = dma.done.wait [#allocation3], 16  }
  0x18   :  { %285 = vsyncadd [#allocation3], 4294967280 }
  0x19   :  { %286 = dma.done.wait [#allocation5], 16  }
  0x1a   :  { %287 = vsyncadd [#allocation5], 4294967280 }
  0x1b   :  { %44 = sfence }
  0x1c   :  { %v331_v0 = vld [vmem:[%s398_s0] sm:$0xff]  ;;  %vm53_vm0 = vcmask 1043456   ;;  %v336_v1 = vld [vmem:[%s398_s0 + $0x8] sm:$0xff]  ;;  %v290_v20 = vmov 0   ;;  %s376_s0 = sld [smem:[#allocation4]]  ;;  %s378_s30 = sld [smem:[#allocation4 + $0x1]] }
  0x1d   :  { %v49_v2 = vcombine.high %v331_v0, %v331_v0  ;;  %v54_v3 = vsel %vm53_vm0, %v331_v0, 0.0  ;;  %v50_v4 = vcombine.high %v336_v1, %v336_v1  ;;  %v64_v5 = vmul.f32 %v331_v0, %v331_v0  ;;  %252 = vset.pattern.permute.xlu0 %v290_v20  ;;  %253 = vset.pattern.permute.xlu1 %v290_v20  ;;  %s247_s6 = sld [smem:[#allocation4 + $0x2]]  ;;  %s244_s7 = sld [smem:[#allocation2 + $0x1]] }
  0x1e   :  { %v65_v6 = vmul.f32 %v336_v1, %v336_v1  ;;  %v59_v8 = vsel %vm53_vm0, %v336_v1, 0.0  ;;  %s142_s8 = sld [smem:[#allocation2]]  ;;  %s245_s9 = sld [smem:[#allocation2 + $0x2]] }
  0x1f   :  { %v55_v7 = vsel %vm53_vm0, %v49_v2, 0.0  ;;  %v60_v9 = vsel %vm53_vm0, %v50_v4, 0.0  ;;  %v68_v11 = vcombine.high %v64_v5, %v64_v5  ;;  %v72_v12 = vsel %vm53_vm0, %v64_v5, 0.0 }
  0x20   :  { %v56_v10 = vadd.f32 %v55_v7, %v54_v3  ;;  %v69_v13 = vcombine.high %v65_v6, %v65_v6  ;;  %v61_v14 = vadd.f32 %v60_v9, %v59_v8  ;;  %v77_v16 = vsel %vm53_vm0, %v65_v6, 0.0 }
  0x21   :  { %v73_v15 = vsel %vm53_vm0, %v68_v11, 0.0 }
  0x22   :  { %57 = vadd.xlane.f32.xlu0 %v56_v10  ;;  %v74_v17 = vadd.f32 %v73_v15, %v72_v12  ;;  %v78_v18 = vsel %vm53_vm0, %v69_v13, 0.0  ;;  %v158_v15 = vstv %s376_s0 }
  0x23   :  { %v79_v19 = vadd.f32 %v78_v18, %v77_v16  ;;  %v162_v16 = vstv %s378_s30  ;;  %v168_v20 = vstv %s247_s6 }
  0x24   :  { %75 = vadd.xlane.f32.xlu1 %v74_v17 }
  0x26   :  { %62 = vadd.xlane.f32.xlu0 %v61_v14 }
  0x28   :  { %80 = vadd.xlane.f32.xlu1 %v79_v19 }
  0xaf   :  { %v58_v21 = vpop.xlane.xlu0 %57 }
  0xb0   :  { %v356_v22 = vmul.f32 0.00390625, %v58_v21 }
  0xb1   :  { %v76_v24 = vpop.xlane.xlu1 %75 }
  0xb2   :  { %v99_v23 = vsel %vm53_vm0, %v356_v22, 0.0  ;;  %v84_v25 = vmul.f32 256.0, %v356_v22  ;;  %v95_v41 = vmul.f32 %v356_v22, %v356_v22 }
  0xb3   :  { %v100_v26 = vrot.slane %v99_v23, 4  ;;  %v63_v27 = vpop.xlane.xlu0 %62 }
  0xb4   :  { %v361_v28 = vmul.f32 0.00390625, %v63_v27  ;;  %v86_v29 = vmul.f32 %v84_v25, %v356_v22 }
  0xb5   :  { %v101_v30 = vadd.f32 %v100_v26, %v99_v23  ;;  %v81_v36 = vpop.xlane.xlu1 %80 }
  0xb6   :  { %v106_v31 = vsel %vm53_vm0, %v361_v28, 0.0  ;;  %v88_v32 = vsub.f32 %v76_v24, %v86_v29  ;;  %v85_v33 = vmul.f32 256.0, %v361_v28  ;;  %v96_v49 = vmul.f32 %v361_v28, %v361_v28 }
  0xb7   :  { %v107_v34 = vrot.slane %v106_v31, 4  ;;  %v102_v35 = vrot.slane %v101_v30, 2  ;;  %v136_v56 = vadd.f32 %v361_v28, %v356_v22 }
  0xb8   :  { %v91_v37 = vmul.f32 0.003921569, %v88_v32  ;;  %v87_v38 = vmul.f32 %v85_v33, %v361_v28 }
  0xb9   :  { %v108_v39 = vadd.f32 %v107_v34, %v106_v31  ;;  %v103_v43 = vadd.f32 %v102_v35, %v101_v30  ;;  %v138_v2 = vmul.f32 0.5, %v136_v56 }
  0xba   :  { %v93_v40 = vmax.f32 %v91_v37, 0.0  ;;  %v89_v42 = vsub.f32 %v81_v36, %v87_v38  ;;  %v147_v37 = vstv %s244_s7  ;;  %v143_v38 = vstv %s142_s8 }
  0xbb   :  { %v109_v44 = vrot.slane %v108_v39, 2  ;;  %v104_v50 = vrot.slane %v103_v43, 1  ;;  %v140_v10 = vmul.f32 %v138_v2, %v138_v2 }
  0xbc   :  { %v97_v45 = vadd.f32 %v95_v41, %v93_v40  ;;  %v92_v46 = vmul.f32 0.003921569, %v89_v42  ;;  %v159_v21 = vmul.f32 %v158_v15, %v93_v40  ;;  %v144_v40 = vmul.f32 %v143_v38, %v356_v22  ;;  %v172_v41 = vld [vmem:[%s401_s3] sm:$0xf] }
  0xbd   :  { %v110_v52 = vadd.f32 %v109_v44, %v108_v39  ;;  %v105_v57 = vadd.f32 %v104_v50, %v103_v43  ;;  %v153_v42 = vstv %s245_s9  ;;  %v179_v22 = vld [vmem:[%s402_s4] sm:$0xf] }
  0xbe   :  { %v116_v47 = vsel %vm53_vm0, %v97_v45, 0.0  ;;  %v94_v48 = vmax.f32 %v92_v46, 0.0 }
  0xbf   :  { %v117_v51 = vrot.slane %v116_v47, 4  ;;  %v111_v59 = vrot.slane %v110_v52, 1  ;;  %v114_v3 = vmul.f32 0.25, %v105_v57 }
  0xc0   :  { %v98_v53 = vadd.f32 %v96_v49, %v94_v48  ;;  %v160_v30 = vmul.f32 %v158_v15, %v94_v48  ;;  %v145_v48 = vmul.f32 %v143_v38, %v361_v28  ;;  %v195_v28 = vlaneseq }
  0xc1   :  { %v118_v54 = vadd.f32 %v117_v51, %v116_v47  ;;  %v112_v5 = vadd.f32 %v111_v59, %v110_v52  ;;  %v132_v12 = vmul.f32 %v114_v3, %v114_v3  ;;  %v148_v39 = vmul.f32 %v147_v37, %v114_v3 }
  0xc2   :  { %v123_v55 = vsel %vm53_vm0, %v98_v53, 0.0  ;;  %v137_v63 = vadd.f32 %v98_v53, %v97_v45  ;;  %v154_v47 = vmul.f32 %v153_v42, %v138_v2 }
  0xc3   :  { %v119_v58 = vrot.slane %v118_v54, 2  ;;  %v124_v60 = vrot.slane %v123_v55, 4  ;;  %v115_v13 = vmul.f32 0.25, %v112_v5  ;;  %v150_v43 = vadd.f32 %v148_v39, %v144_v40 }
  0xc4   :  { %v139_v9 = vmul.f32 0.5, %v137_v63 }
  0xc5   :  { %v120_v61 = vadd.f32 %v119_v58, %v118_v54  ;;  %v125_v62 = vadd.f32 %v124_v60, %v123_v55  ;;  %v133_v25 = vmul.f32 %v115_v13, %v115_v13  ;;  %v149_v44 = vmul.f32 %v147_v37, %v115_v13 }
  0xc6   :  { %v141_v19 = vsub.f32 %v139_v9, %v140_v10  ;;  %v155_v49 = vadd.f32 %v154_v47, %v150_v43  ;;  %v291_v58 = vmov 839922192  }
  0xc7   :  { %v121_v4 = vrot.slane %v120_v61, 1  ;;  %v126_v6 = vrot.slane %v125_v62, 2  ;;  %v151_v50 = vadd.f32 %v149_v44, %v145_v48  ;;  %v193_v59 = vunpack.c.l.s4 %v291_v58 }
  0xc8   :  { %v169_v29 = vmul.f32 %v168_v20, %v141_v19 }
  0xc9   :  { %v122_v7 = vadd.f32 %v121_v4, %v120_v61  ;;  %v127_v8 = vadd.f32 %v126_v6, %v125_v62  ;;  %v156_v54 = vadd.f32 %v154_v47, %v151_v50  ;;  %v194_v60 = vunpack.c.0.s8 %v193_v59 }
  0xca   :  { %v196_v61 = vshrl.u32 %v195_v28, 7 }
  0xcb   :  { %v130_v11 = vmul.f32 0.25, %v122_v7  ;;  %v128_v14 = vrot.slane %v127_v8, 1 }
  0xcc   :  { %v197_v62 = vsub.s32 %v194_v60, %v196_v61 }
  0xcd   :  { %v134_v17 = vsub.f32 %v130_v11, %v132_v12  ;;  %v129_v18 = vadd.f32 %v128_v14, %v127_v8 }
  0xcf   :  { %v163_v23 = vmul.f32 %v162_v16, %v134_v17  ;;  %v131_v24 = vmul.f32 0.25, %v129_v18 }
  0xd1   :  { %v165_v26 = vadd.f32 %v163_v23, %v159_v21  ;;  %v135_v27 = vsub.f32 %v131_v24, %v133_v25 }
  0xd3   :  { %v164_v31 = vmul.f32 %v162_v16, %v135_v27  ;;  %v170_v32 = vadd.f32 %v169_v29, %v165_v26 }
  0xd5   :  { %v166_v33 = vadd.f32 %v164_v31, %v160_v30  ;;  %v173_v34 = vadd.f32 1e-05, %v170_v32 }
  0xd7   :  { %v171_v35 = vadd.f32 %v169_v29, %v166_v33  ;;  %256 = vrsqrt.f32 %v173_v34 }
  0xd9   :  { %v174_v36 = vadd.f32 1e-05, %v171_v35 }
  0xdb   :  { %258 = vrsqrt.f32 %v174_v36 }
  0xe1   :  { %v257_v45 = vpop.eup %256 }
  0xe2   :  { %v177_v46 = vmul.f32 %v257_v45, %v172_v41 }
  0xe4   :  { %186 = vperm.xlu0 %252, %v177_v46   ;;  %v180_v53 = vmul.f32 %v177_v46, %v155_v49 }
  0xe5   :  { %v259_v51 = vpop.eup %258 }
  0xe6   :  { %v178_v52 = vmul.f32 %v259_v51, %v172_v41  ;;  %v182_v55 = vsub.f32 %v179_v22, %v180_v53 }
  0xe8   :  { %190 = vperm.xlu1 %253, %v178_v52   ;;  %v181_v56 = vmul.f32 %v178_v52, %v156_v54 }
  0xea   :  { %v183_v57 = vsub.f32 %v179_v22, %v181_v56 }
  0xec   :  { %212 = vperm.xlu1 %253, %v182_v55  }
  0xf0   :  { %216 = vperm.xlu1 %253, %v183_v57  }
 0x163   :  { %v187_v63 = vpop.permute.xlu0 %186 }
 0x164   :  { %v198_v3 = vrot.slane %v187_v63, %v197_v62 }
 0x166   :  { %v208_v5 = vmul.f32 %v198_v3, %v331_v0 }
 0x167   :  { %v191_v2 = vpop.permute.xlu1 %190 }
 0x168   :  { %v205_v6 = vrot.slane %v191_v2, %v197_v62 }
 0x16a   :  { %v209_v10 = vmul.f32 %v205_v6, %v336_v1 }
 0x16b   :  { %v213_v4 = vpop.permute.xlu1 %212 }
 0x16c   :  { %v224_v7 = vrot.slane %v213_v4, %v197_v62 }
 0x16e   :  { %v234_v8 = vadd.f32 %v224_v7, %v208_v5 }
 0x16f   :  { %v217_v9 = vpop.permute.xlu1 %216 }
 0x170   :  { %236 = vst [vmem:[%s403_s5] sm:$0xff] %v234_v8  ;;  %v231_v11 = vrot.slane %v217_v9, %v197_v62 }
 0x172   :  { %v235_v12 = vadd.f32 %v231_v11, %v209_v10 }
 0x174   :  { %237 = vst [vmem:[%s403_s5 + $0x8] sm:$0xff] %v235_v12 }
 0x175   :  { %242 = vsyncpa [#allocation3], 1 }
 0x176   :  { %243 = vsyncpa [#allocation5], 1 }

</bundles_post_ra>
